<compile_context>
chip_gen: v7x
topology: tpu7x:2x2x1
jax: 0.10.0
libtpu: 0.0.40
codegen_flags: <defaults>
</compile_context>

<pallas_src>
import functools

import jax
import jax.numpy as jnp
from jax.experimental import pallas as pl
from jax.experimental.pallas import tpu as pltpu


def _rmsnorm_kernel(x_ref, g_ref, o_ref, *, scale, eps):
    # x_ref: (tile_rows, dim)   g_ref: (1, dim)   o_ref: (tile_rows, dim)
    x = x_ref[...].astype(jnp.float32)
    g = g_ref[...].astype(jnp.float32)

    # L2 norm along the last (lane) axis, scaled by dim**-0.5.
    sq_sum = jnp.sum(x * x, axis=-1, keepdims=True)          # (tile_rows, 1)
    norm = jnp.sqrt(sq_sum) * scale

    # torch .clamp(min=eps), then one reciprocal per row on the tiny
    # (tile_rows, 1) column (keeps the expensive op off the full-width VPU
    # path; the clamp also keeps padded/garbage rows of a partial block finite).
    inv = pl.reciprocal(jnp.maximum(norm, eps), approx=False)

    o_ref[...] = ((x * inv) * g).astype(o_ref.dtype)


def _choose_tile_rows(rows, dim, dtype):
    """Pick a row tile sized to a VMEM budget rather than a fixed constant."""
    itemsize = jnp.dtype(dtype).itemsize
    # Sublane packing: 8 rows for 32-bit, 16 for 16-bit, 32 for 8-bit dtypes.
    sub = max(8, 32 // max(itemsize, 1))
    row_bytes = dim * itemsize

    # VMEM in flight ~= 2 (double-buffer) * (in tile + out tile) = 4 * tile.
    # Keep it under ~12 MiB so it fits the default scoped VMEM on every
    # generation (v5e 16 MiB, v6e/v7x 32 MiB) with headroom for g.
    budget = 12 * 1024 * 1024
    tile = budget // (4 * row_bytes)
    tile = max(sub, (tile // sub) * sub)
    tile = min(tile, 1024)  # diminishing returns past ~1K rows

    rows_up = ((rows + sub - 1) // sub) * sub
    tile = min(tile, rows_up)

    # Keep >= ~8 grid steps when the problem is big enough so v7x can shard
    # the row axis across both TensorCores (no-op on v5e/v6e), but never
    # shrink tiles below 256 rows (keeps HBM streaming efficient).
    while tile * 8 > rows_up and (tile // 2) >= 256:
        tile = max(sub, ((tile // 2) // sub) * sub)

    return tile


def rmsnorm(x, g, eps=1e-8, tile_rows=None):
    """x: (..., dim), g: (dim,). Returns same shape/dtype as x."""
    dim = x.shape[-1]
    scale = dim ** (-0.5)
    orig_shape = x.shape

    x2 = x.reshape(-1, dim)                 # flatten leading axes -> (rows, dim)
    rows = x2.shape[0]
    g2 = g.reshape(1, dim)

    if tile_rows is None:
        tile_rows = _choose_tile_rows(rows, dim, x.dtype)

    # NOTE: real model dims are multiples of 128; dim < 128 (toy sizes) only
    # costs masked partial stores, which is acceptable for tests.

    kernel = functools.partial(_rmsnorm_kernel, scale=scale, eps=eps)

    out = pl.pallas_call(
        kernel,
        out_shape=jax.ShapeDtypeStruct((rows, dim), x.dtype),
        grid=(pl.cdiv(rows, tile_rows),),   # partial last block handled by Pallas
        in_specs=[
            pl.BlockSpec((tile_rows, dim), lambda i: (i, 0)),
            pl.BlockSpec((1, dim), lambda i: (0, 0)),   # constant -> no re-DMA
        ],
        out_specs=pl.BlockSpec((tile_rows, dim), lambda i: (i, 0)),
        compiler_params=pltpu.CompilerParams(
            dimension_semantics=("parallel",),
            vmem_limit_bytes=32 * 1024 * 1024,
        ),
    )(x2, g2)

    return out.reshape(orig_shape)


def rmsnorm_ref(x, g, eps=1e-8):
    dim = x.shape[-1]
    scale = dim ** (-0.5)
    norm = jnp.linalg.norm(x.astype(jnp.float32), axis=-1, keepdims=True) * scale
    norm = jnp.maximum(norm, eps)
    return (x.astype(jnp.float32) / norm * g.astype(jnp.float32)).astype(x.dtype)


if __name__ == "__main__":
    key = jax.random.PRNGKey(0)
    batch, seq, hidden = 2, 8, 32

    x = jax.random.normal(key, (batch, seq, hidden), dtype=jnp.float32)
    # nn.Parameter(torch.ones(dim)) -> deterministic ones
    g = jnp.ones((hidden,), dtype=jnp.float32)

    y = rmsnorm(x, g, eps=1e-8)
    y = jax.block_until_ready(y)

    y_ref = rmsnorm_ref(x, g, eps=1e-8)
    assert y.shape == x.shape and y.dtype == x.dtype
    assert jnp.allclose(y, y_ref, atol=1e-5, rtol=1e-5)

    # Second check: rows not a multiple of the tile -> exercises the
    # partial-block (masked write) path without any HBM-side padding.
    x2 = jax.random.normal(jax.random.PRNGKey(1), (3, 5, hidden), dtype=jnp.float32)
    y2 = jax.block_until_ready(rmsnorm(x2, g, eps=1e-8))
    assert jnp.allclose(y2, rmsnorm_ref(x2, g, eps=1e-8), atol=1e-5, rtol=1e-5)

    print("KERNEL_OK")
</pallas_src>

<mosaic_0001>
module attributes {stable_mosaic.version = 11 : i64} {
  func.func @_rmsnorm_kernel(%arg0: i32, %arg1: memref<16x32xf32, #tpu.memory_space<vmem>>, %arg2: memref<1x32xf32, #tpu.memory_space<vmem>>, %arg3: memref<16x32xf32, #tpu.memory_space<vmem>>) attributes {dimension_semantics = [#tpu.dimension_semantics<parallel>], iteration_bounds = array<i64: 1>, scalar_prefetch = 0 : i64, scratch_operands = 0 : i64, tpu.core_type = #tpu.core_type<tc>, window_params = [{transform_indices = @transform_0, window_bounds = array<i64: 16, 32>}, {pipeline_mode = #tpu.pipeline_mode<synchronous>, transform_indices = @transform_1, window_bounds = array<i64: 1, 32>}, {transform_indices = @transform_2, window_bounds = array<i64: 16, 32>}]} {
    %c0 = arith.constant 0 : index
    %c0_0 = arith.constant 0 : index
    %0 = vector.load %arg1[%c0, %c0_0] : memref<16x32xf32, #tpu.memory_space<vmem>>, vector<16x32xf32>
    %c0_1 = arith.constant 0 : index
    %c0_2 = arith.constant 0 : index
    %1 = vector.load %arg2[%c0_1, %c0_2] : memref<1x32xf32, #tpu.memory_space<vmem>>, vector<1x32xf32>
    %2 = arith.mulf %0, %0 : vector<16x32xf32>
    %cst = arith.constant dense<0.000000e+00> : vector<16xf32>
    %3 = vector.multi_reduction <add>, %2, %cst [1] : vector<16x32xf32> to vector<16xf32>
    %4 = vector.shape_cast %3 : vector<16xf32> to vector<16x1xf32>
    %5 = math.sqrt %4 : vector<16x1xf32>
    %cst_3 = arith.constant 0.176776692 : f32
    %6 = vector.broadcast %cst_3 : f32 to vector<16x1xf32>
    %7 = arith.mulf %5, %6 : vector<16x1xf32>
    %cst_4 = arith.constant 9.99999993E-9 : f32
    %8 = vector.broadcast %cst_4 : f32 to vector<16x1xf32>
    %9 = arith.maximumf %7, %8 : vector<16x1xf32>
    %10 = tpu.reciprocal %9 : vector<16x1xf32> -> vector<16x1xf32>
    %11 = vector.broadcast %10 : vector<16x1xf32> to vector<16x32xf32>
    %12 = arith.mulf %0, %11 : vector<16x32xf32>
    %13 = vector.broadcast %1 : vector<1x32xf32> to vector<16x32xf32>
    %14 = arith.mulf %12, %13 : vector<16x32xf32>
    %c0_5 = arith.constant 0 : index
    %c0_6 = arith.constant 0 : index
    %15 = vector.load %arg3[%c0_5, %c0_6] : memref<16x32xf32, #tpu.memory_space<vmem>>, vector<16x32xf32>
    tpu.vector_store %arg3[%c0_5, %c0_6], %14 {strides = array<i32>} : memref<16x32xf32, #tpu.memory_space<vmem>>, vector<16x32xf32>,
    return
  }
  func.func @transform_0(%arg0: i32) -> (i32, i32) {
    %c0_i32 = arith.constant 0 : i32
    %c0_i32_0 = arith.constant 0 : i32
    return %arg0, %c0_i32 : i32, i32
  }
  func.func @transform_1(%arg0: i32) -> (i32, i32) {
    %c0_i32 = arith.constant 0 : i32
    %c0_i32_0 = arith.constant 0 : i32
    %c0_i32_1 = arith.constant 0 : i32
    return %c0_i32, %c0_i32_0 : i32, i32
  }
  func.func @transform_2(%arg0: i32) -> (i32, i32) {
    %c0_i32 = arith.constant 0 : i32
    %c0_i32_0 = arith.constant 0 : i32
    return %arg0, %c0_i32 : i32, i32
  }
}

</mosaic_0001>

<bundles_post_ra>
// kernel: tpu_custom_call.1
= control target key start
LH: loop header
LB: loop body
LE: loop exit
PB: predicated region body
PF: predicated region fallthrough
CT: control target
= control target key end

     0   :  { %7 = vsyncpa [#allocation3], 0  ;;  %s204_s0 = inlined_call_operand.hbm [shape: f32[16,32], index: 0, kind: input, shape index: {}]   ;;  %s205_s1 = inlined_call_operand.vmem [shape: f32[1,32], index: 1, kind: input, shape index: {}]   ;;  %s206_s2 = inlined_call_operand.hbm [shape: f32[16,32], index: 2, kind: output, shape index: {}]  }
   0x1   :  { %8 = vsyncpa [#allocation4], 0  ;;  %s148_s9 = smov [#allocation2]   ;;  %s100_s13 = scalar_lea.hbm %s204_s0, 256 }
   0x2   :  { %s14_s10 = sshll.u32 %s148_s9, 4  ;;  %p101_p0 = scmp.ne.s32.totalorder %s204_s0, %s100_s13  ;;  %s15_s10 = int_to_ptr.vmem [resolvable:$true] %s14_s10 }
   0x3   :  { %p104_p1 = scmp.lt.u32.totalorder %s100_s13, %s204_s0 }
   0x5   :  { %p106_p2 = pnand %p104_p1, %p101_p0 }
   0x7   :  { %109 = shalt.err (!%p106_p2)
}
   0x8   :  { %s110_s18 = scalar_lea.vmem %s15_s10, 256  ;;  %p115_p4 = scmp.lt.s32.totalorder %s15_s10, %s15_s10 }
   0x9   :  { %p111_p3 = scmp.ne.s32.totalorder %s15_s10, %s110_s18  ;;  %p116_p5 = scmp.lt.s32.totalorder %s110_s18, %s110_s18 }
   0xb   :  { %p117_p6 = por %p116_p5, %p115_p4 }
   0xd   :  { %p118_p7 = pnand %p117_p6, %p111_p3 }
   0xf   :  { %121 = shalt.err (!%p118_p7)
}
  0x10   :  { %s149_s19 = smov 128   ;;  %s150_s20 = smov 8  }
  0x11   :  { %20 = dma.hbm_to_vmem [thread:$0]  %s204_s0, 256, %s15_s10, [#allocation3], %s149_s19, %s149_s19, %s150_s20  }
  0x12   :  { %144 = dma.done.wait [#allocation3], 256  }
  0x13   :  { %145 = vsyncadd [#allocation3], 4294967040  ;;  %v26_v0 = vld [vmem:[#allocation2] sm:$0xff]  ;;  %vm31_vm0 = vcmask 261120   ;;  %v27_v1 = vld [vmem:[#allocation2 + $0x8] sm:$0xff]  ;;  %s151_s24 = smov [#allocation5]  }
  0x14   :  { %v29_v2 = vmul.f32 %v26_v0, %v26_v0  ;;  %v30_v3 = vmul.f32 %v27_v1, %v27_v1  ;;  %v87_v23 = vld [vmem:[%s205_s1] ss:$0 sm:$0xff]  ;;  %s75_s25 = sshll.u32 %s151_s24, 4  ;;  %s76_s25 = int_to_ptr.vmem [resolvable:$true] %s75_s25 }
  0x15   :  { %s122_s26 = scalar_lea.vmem %s76_s25, 256  ;;  %p127_p9 = scmp.lt.s32.totalorder %s76_s25, %s76_s25 }
  0x16   :  { %v32_v4 = vsel %vm31_vm0, %v29_v2, 0.0  ;;  %v35_v5 = vsel %vm31_vm0, %v30_v3, 0.0  ;;  %p123_p8 = scmp.ne.s32.totalorder %s76_s25, %s122_s26  ;;  %p128_p10 = scmp.lt.s32.totalorder %s122_s26, %s122_s26 }
  0x17   :  { %33 = vadd.xlane.f32.xlu0 %v32_v4 }
  0x18   :  { %p129_p11 = por %p128_p10, %p127_p9 }
  0x1a   :  { %p130_p12 = pnand %p129_p11, %p123_p8 }
  0x1b   :  { %36 = vadd.xlane.f32.xlu0 %v35_v5 }
  0xa4   :  { %v34_v6 = vpop.xlane.xlu0 %33 }
  0xa5   :  { %92 = vrsqrt.f32 %v34_v6  ;;  %vm40_vm1 = vcmp.eq.f32.partialorder %v34_v6, inf  ;;  %v43_v10 = vand.u32 2147483648, %v34_v6  ;;  %vm42_vm2 = vcmp.eq.f32.partialorder %v34_v6, 0.0 }
  0xa8   :  { %v37_v7 = vpop.xlane.xlu0 %36 }
  0xa9   :  { %94 = vrsqrt.f32 %v37_v7  ;;  %vm47_vm3 = vcmp.eq.f32.partialorder %v37_v7, inf  ;;  %v50_v16 = vand.u32 2147483648, %v37_v7  ;;  %vm49_vm4 = vcmp.eq.f32.partialorder %v37_v7, 0.0 }
  0xaf   :  { %v93_v8 = vpop.eup %92 }
  0xb0   :  { %v39_v9 = vmul.f32 %v93_v8, %v34_v6 }
  0xb2   :  { %v41_v11 = vsel %vm40_vm1, %v34_v6, %v39_v9 }
  0xb3   :  { %v95_v12 = vpop.eup %94  ;;  %v44_v13 = vsel %vm42_vm2, %v43_v10, %v41_v11 }
  0xb4   :  { %v52_v14 = vmul.f32 0.17677669, %v44_v13  ;;  %v46_v15 = vmul.f32 %v95_v12, %v37_v7 }
  0xb6   :  { %v54_v17 = vmax.f32 %v52_v14, 1e-08  ;;  %v48_v18 = vsel %vm47_vm3, %v37_v7, %v46_v15 }
  0xb7   :  { %v51_v19 = vsel %vm49_vm4, %v50_v16, %v48_v18 }
  0xb8   :  { %96 = vrcp.f32 %v54_v17  ;;  %v53_v20 = vmul.f32 0.17677669, %v51_v19 }
  0xba   :  { %v55_v21 = vmax.f32 %v53_v20, 1e-08 }
  0xbc   :  { %98 = vrcp.f32 %v55_v21 }
  0xc2   :  { %v97_v22 = vpop.eup %96 }
  0xc3   :  { %v58_v24 = vmul.f32 %v97_v22, %v26_v0 }
  0xc5   :  { %v66_v25 = vmul.f32 %v87_v23, %v58_v24 }
  0xc6   :  { %v99_v26 = vpop.eup %98 }
  0xc7   :  { %v59_v27 = vmul.f32 %v99_v26, %v27_v1  ;;  %68 = vst.msk [vmem:[#allocation5] sm:$0xff] %vm31_vm0, %v66_v25 }
  0xc9   :  { %v67_v28 = vmul.f32 %v87_v23, %v59_v27 }
  0xcb   :  { %69 = vst.msk [vmem:[#allocation5 + $0x8] sm:$0xff] %vm31_vm0, %v67_v28 }
  0xcc   :  { %133 = shalt.err (!%p130_p12)
}
  0xcd   :  { %s134_s28 = scalar_lea.hbm %s206_s2, 256 }
  0xce   :  { %p135_p13 = scmp.ne.s32.totalorder %s206_s2, %s134_s28  ;;  %p138_p0 = scmp.lt.u32.totalorder %s134_s28, %s206_s2 }
  0xd0   :  { %p140_p1 = pnand %p138_p0, %p135_p13 }
  0xd2   :  { %143 = shalt.err (!%p140_p1)
}
  0xd3   :  { %81 = dma.vmem_to_hbm [thread:$0]  %s76_s25, 256, %s206_s2, [#allocation4], %s149_s19, %s149_s19, %s150_s20  }
  0xd4   :  { %146 = dma.done.wait [#allocation4], 256  }
  0xd5   :  { %147 = vsyncadd [#allocation4], 4294967040 }
  0xd6   :  { %85 = vsyncpa [#allocation3], 1 }
  0xd7   :  { %86 = vsyncpa [#allocation4], 1 }

</bundles_post_ra>
